<compile_context>
chip_gen: v5e
topology: v5e:2x2
jax: 0.10.0
libtpu: 0.0.40
codegen_flags: <defaults>
</compile_context>

<pallas_src>
import jax
import jax.numpy as jnp
from jax.experimental import pallas as pl
from jax.experimental.pallas import tpu as pltpu


D_IN = 128
HIDDEN = 64


def _reward_model_kernel(x_ref, w1_ref, b1_ref, w2_ref, b2_ref, o_ref):
    # fc1 on the MXU; accumulate in f32 regardless of x/w1 storage dtype.
    h = jnp.dot(x_ref[...], w1_ref[...], preferred_element_type=jnp.float32)
    h = jnp.maximum(h + b1_ref[...], 0.0)          # bias + ReLU in f32 (VPU)
    # fc2 (64 -> 1) off the MXU: VALU multiply + XLU lane reduction.
    out = jnp.sum(h * w2_ref[...], axis=-1, keepdims=True) + b2_ref[0, 0]
    o_ref[...] = out.astype(o_ref.dtype)


def reward_model_forward(x, w1, b1, w2, b2, *, block_b=4096, use_bf16=True):
    """Forward pass of reward_model.

    x : [B, 128] float32
    w1: [128, 64] (fc1 weight, transposed vs. PyTorch's [64, 128])
    b1: [1, 64]
    w2: [1, 64]   (fc2 weight, same [out=1, in=64] layout as PyTorch)
    b2: [1, 1]
    returns: [B, 1] float32
    """
    B, d_in = x.shape
    assert d_in == D_IN
    assert w1.shape == (D_IN, HIDDEN)
    assert b1.shape == (1, HIDDEN)
    assert w2.shape == (1, HIDDEN)
    assert b2.shape == (1, 1)

    # Batch tile: multiple of 16 (bf16 sublane packing; also satisfies the f32
    # sublane-of-8 rule), capped so double-buffered x tiles fit VMEM on every
    # TPU generation (incl. v7x's smaller VMEM).
    tb = max(16, min(block_b, B))
    tb = ((tb + 15) // 16) * 16
    num_tiles = -(-B // tb)
    b_pad = num_tiles * tb
    if b_pad != B:
        x = jnp.pad(x, ((0, b_pad - B), (0, 0)))

    if use_bf16:
        x_in = x.astype(jnp.bfloat16)
        w1_in = w1.astype(jnp.bfloat16)
    else:
        x_in = x.astype(jnp.float32)
        w1_in = w1.astype(jnp.float32)
    b1 = b1.astype(jnp.float32)
    w2 = w2.astype(jnp.float32)
    b2 = b2.astype(jnp.float32)

    flops = 2 * b_pad * D_IN * HIDDEN + 2 * b_pad * HIDDEN
    bytes_accessed = (
        b_pad * D_IN * x_in.dtype.itemsize       # read x
        + D_IN * HIDDEN * w1_in.dtype.itemsize   # read w1 (once)
        + (HIDDEN + HIDDEN + 1) * 4              # b1, w2, b2
        + b_pad * 4                              # write out
    )

    out = pl.pallas_call(
        _reward_model_kernel,
        out_shape=jax.ShapeDtypeStruct((b_pad, 1), jnp.float32),
        grid=(num_tiles,),
        in_specs=[
            pl.BlockSpec((tb, D_IN), lambda i: (i, 0)),          # x: batch-tiled
            pl.BlockSpec((D_IN, HIDDEN), lambda i: (0, 0)),      # w1: resident
            pl.BlockSpec((1, HIDDEN), lambda i: (0, 0)),         # b1: resident
            pl.BlockSpec((1, HIDDEN), lambda i: (0, 0)),         # w2 row: resident
            pl.BlockSpec(memory_space=pltpu.MemorySpace.SMEM),   # b2 scalar
        ],
        out_specs=pl.BlockSpec((tb, 1), lambda i: (i, 0)),
        compiler_params=pltpu.CompilerParams(
            dimension_semantics=("parallel",),
        ),
        cost_estimate=pl.CostEstimate(
            flops=flops, transcendentals=0, bytes_accessed=bytes_accessed),
    )(x_in, w1_in, b1, w2, b2)

    return out[:B]


def init_params(key):
    """PyTorch nn.Linear default init (U[-1/sqrt(fan_in), +1/sqrt(fan_in)]).

    fc1 weight is stored transposed ([in=128, out=64]) so the kernel does a
    plain row-major x @ W1 matmul; fc2 weight keeps PyTorch's [out=1, in=64]
    row layout since the kernel consumes it as a broadcast row."""
    k1, k2, k3, k4 = jax.random.split(key, 4)
    bound1 = 1.0 / jnp.sqrt(128.0)
    bound2 = 1.0 / jnp.sqrt(64.0)
    w1 = jax.random.uniform(k1, (D_IN, HIDDEN), jnp.float32, -bound1, bound1)
    b1 = jax.random.uniform(k2, (1, HIDDEN), jnp.float32, -bound1, bound1)
    w2 = jax.random.uniform(k3, (1, HIDDEN), jnp.float32, -bound2, bound2)
    b2 = jax.random.uniform(k4, (1, 1), jnp.float32, -bound2, bound2)
    return w1, b1, w2, b2


if __name__ == "__main__":
    key = jax.random.PRNGKey(0)
    k_x, k_p = jax.random.split(key)

    B = 256  # small demo batch; block_b=128 -> 2 pipelined grid steps
    x = jax.random.normal(k_x, (B, D_IN), jnp.float32)
    w1, b1, w2, b2 = init_params(k_p)

    # pure-JAX reference (module semantics)
    ref = jnp.maximum(x @ w1 + b1, 0.0) @ w2.T + b2

    # exact f32 path (matches the PyTorch module's numerics)
    out_f32 = jax.block_until_ready(
        reward_model_forward(x, w1, b1, w2, b2, block_b=128, use_bf16=False))
    assert out_f32.shape == (B, 1)
    assert jnp.allclose(out_f32, ref, atol=1e-4, rtol=1e-4)

    # bf16-storage path (halves HBM read traffic; f32 accumulation)
    out_bf16 = jax.block_until_ready(
        reward_model_forward(x, w1, b1, w2, b2, block_b=128, use_bf16=True))
    assert out_bf16.shape == (B, 1)
    assert jnp.allclose(out_bf16, ref, atol=2e-2, rtol=2e-2)

    print("KERNEL_OK")
</pallas_src>

<mosaic_0001>
module attributes {stable_mosaic.version = 11 : i64} {
  func.func @_reward_model_kernel(%arg0: i32, %arg1: memref<128x128xf32, #tpu.memory_space<vmem>>, %arg2: memref<128x64xf32, #tpu.memory_space<vmem>>, %arg3: memref<1x64xf32, #tpu.memory_space<vmem>>, %arg4: memref<1x64xf32, #tpu.memory_space<vmem>>, %arg5: memref<1x1xf32, #tpu.memory_space<smem>>, %arg6: memref<128x1xf32, #tpu.memory_space<vmem>>) attributes {dimension_semantics = [#tpu.dimension_semantics<parallel>], iteration_bounds = array<i64: 2>, scalar_prefetch = 0 : i64, scratch_operands = 0 : i64, tpu.core_type = #tpu.core_type<tc>, window_params = [{transform_indices = @transform_0, window_bounds = array<i64: 128, 128>}, {pipeline_mode = #tpu.pipeline_mode<synchronous>, transform_indices = @transform_1, window_bounds = array<i64: 128, 64>}, {pipeline_mode = #tpu.pipeline_mode<synchronous>, transform_indices = @transform_2, window_bounds = array<i64: 1, 64>}, {pipeline_mode = #tpu.pipeline_mode<synchronous>, transform_indices = @transform_3, window_bounds = array<i64: 1, 64>}, {transform_indices = @transform_4, window_bounds = array<i64: 1, 1>}, {transform_indices = @transform_5, window_bounds = array<i64: 128, 1>}]} {
    %c0 = arith.constant 0 : index
    %c0_0 = arith.constant 0 : index
    %0 = vector.load %arg1[%c0, %c0_0] : memref<128x128xf32, #tpu.memory_space<vmem>>, vector<128x128xf32>
    %c0_1 = arith.constant 0 : index
    %c0_2 = arith.constant 0 : index
    %1 = vector.load %arg2[%c0_1, %c0_2] : memref<128x64xf32, #tpu.memory_space<vmem>>, vector<128x64xf32>
    %cst = arith.constant dense<0.000000e+00> : vector<128x64xf32>
    %2 = tpu.matmul %0, %1, %cst {dimension_numbers = #tpu.dot_dimension_numbers<[1], [0], [0], [1], [0, 0, 1, 1], [], []>} : vector<128x128xf32>, vector<128x64xf32>, vector<128x64xf32> -> vector<128x64xf32>
    %c0_3 = arith.constant 0 : index
    %c0_4 = arith.constant 0 : index
    %3 = vector.load %arg3[%c0_3, %c0_4] : memref<1x64xf32, #tpu.memory_space<vmem>>, vector<1x64xf32>
    %4 = vector.broadcast %3 : vector<1x64xf32> to vector<128x64xf32>
    %5 = arith.addf %2, %4 : vector<128x64xf32>
    %cst_5 = arith.constant 0.000000e+00 : f32
    %6 = vector.broadcast %cst_5 : f32 to vector<128x64xf32>
    %7 = arith.maximumf %5, %6 : vector<128x64xf32>
    %c0_6 = arith.constant 0 : index
    %c0_7 = arith.constant 0 : index
    %8 = vector.load %arg4[%c0_6, %c0_7] : memref<1x64xf32, #tpu.memory_space<vmem>>, vector<1x64xf32>
    %9 = vector.broadcast %8 : vector<1x64xf32> to vector<128x64xf32>
    %10 = arith.mulf %7, %9 : vector<128x64xf32>
    %cst_8 = arith.constant dense<0.000000e+00> : vector<128xf32>
    %11 = vector.multi_reduction <add>, %10, %cst_8 [1] : vector<128x64xf32> to vector<128xf32>
    %12 = vector.shape_cast %11 : vector<128xf32> to vector<128x1xf32>
    %c0_9 = arith.constant 0 : index
    %c0_10 = arith.constant 0 : index
    %13 = memref.load %arg5[%c0_9, %c0_10] : memref<1x1xf32, #tpu.memory_space<smem>>
    %14 = vector.broadcast %13 : f32 to vector<128x1xf32>
    %15 = arith.addf %12, %14 : vector<128x1xf32>
    %c0_11 = arith.constant 0 : index
    %c0_12 = arith.constant 0 : index
    %16 = vector.load %arg6[%c0_11, %c0_12] : memref<128x1xf32, #tpu.memory_space<vmem>>, vector<128x1xf32>
    tpu.vector_store %arg6[%c0_11, %c0_12], %15 {strides = array<i32>} : memref<128x1xf32, #tpu.memory_space<vmem>>, vector<128x1xf32>,
    return
  }
  func.func @transform_0(%arg0: i32) -> (i32, i32) {
    %c0_i32 = arith.constant 0 : i32
    %c0_i32_0 = arith.constant 0 : i32
    return %arg0, %c0_i32 : i32, i32
  }
  func.func @transform_1(%arg0: i32) -> (i32, i32) {
    %c0_i32 = arith.constant 0 : i32
    %c0_i32_0 = arith.constant 0 : i32
    %c0_i32_1 = arith.constant 0 : i32
    return %c0_i32, %c0_i32_0 : i32, i32
  }
  func.func @transform_2(%arg0: i32) -> (i32, i32) {
    %c0_i32 = arith.constant 0 : i32
    %c0_i32_0 = arith.constant 0 : i32
    %c0_i32_1 = arith.constant 0 : i32
    return %c0_i32, %c0_i32_0 : i32, i32
  }
  func.func @transform_3(%arg0: i32) -> (i32, i32) {
    %c0_i32 = arith.constant 0 : i32
    %c0_i32_0 = arith.constant 0 : i32
    %c0_i32_1 = arith.constant 0 : i32
    return %c0_i32, %c0_i32_0 : i32, i32
  }
  func.func @transform_4(%arg0: i32) -> (i32, i32) {
    %c0_i32 = arith.constant 0 : i32
    %c0_i32_0 = arith.constant 0 : i32
    %c0_i32_1 = arith.constant 0 : i32
    return %c0_i32, %c0_i32_0 : i32, i32
  }
  func.func @transform_5(%arg0: i32) -> (i32, i32) {
    %c0_i32 = arith.constant 0 : i32
    %c0_i32_0 = arith.constant 0 : i32
    return %arg0, %c0_i32 : i32, i32
  }
}

</mosaic_0001>

<bundles_post_ra>
// kernel: tpu_custom_call.1
= control target key start
LH: loop header
LB: loop body
LE: loop exit
PB: predicated region body
PF: predicated region fallthrough
CT: control target
= control target key end

     0   :  { %s993_s0 = inlined_call_operand.hbm [shape: f32[256,128], index: 0, kind: input, shape index: {}]   ;;  %s994_s1 = inlined_call_operand.vmem [shape: f32[128,64], index: 1, kind: input, shape index: {}]   ;;  %s995_s2 = inlined_call_operand.vmem [shape: f32[1,64], index: 2, kind: input, shape index: {}]   ;;  %s996_s3 = inlined_call_operand.vmem [shape: f32[1,64], index: 3, kind: input, shape index: {}]   ;;  %s997_s4 = inlined_call_operand.<no memory space> [shape: f32[1,1], index: 4, kind: input, shape index: {}]   ;;  %s998_s5 = inlined_call_operand.vmem [shape: f32[256,1], index: 5, kind: output, shape index: {}]  }
   0x1   :  { %10 = sst [smem:[#allocation2]] %s997_s4 }
   0x2   :  { %11 = vsyncpa [#allocation4], 0 }
   0x3   :  { %13 = vsyncpa [#allocation4 + $0x1], 0  ;;  %s744_s20 = smov 0   ;;  %s746_s21 = smov 0  }
   0x4   :  { %s748_s22 = smov 0   ;;  %s750_s23 = smov 0  }
   0x5 LB: > { %s538_s4 = sadd.s32 4294967295, %s707_s23   ;;  %s764_s24 = sadd.s32 1, %s707_s23   ;;  %s707_s23 = sphi %s750_s23, %s1005_s23   ;;  %s703_s22 = sphi %s748_s22, %s1004_s22   ;;  %s699_s21 = sphi %s746_s21, %s1003_s21   ;;  %s695_s20 = sphi %s744_s20, %s1002_s20  }
   0x6   : > { %s23_s25 = ssub.s32 %s707_s23, %s764_s24  ;;  %s26_s26 = sadd.s32 1, %s703_s22 }
   0x7   : > { %p24_p0 = scmp.eq.s32.totalorder %s23_s25, 0  ;;  %p33_p1 = scmp.ne.s32.totalorder %s703_s22, %s699_s21 }
   0x8   : > { %p34_p2 = scmp.eq.s32.totalorder %s707_s23, 0  ;;  %p39_p3 = scmp.ne.s32.totalorder %s699_s21, %s695_s20 }
   0x9   : > { %s774_s27 = scalar_select %p24_p0, %s703_s22, %s26_s26  }
   0xa   : > { %p776_p4 = por %p34_p2, %p33_p1  ;;  %p40_p5 = scmp.eq.s32.totalorder %s538_s4, 0 }
   0xb   : > { %p606_p6 = scmp.lt.s32.totalorder %s707_s23, 2  ;;  %s185_s30 = sand.u32 1, %s703_s22  }
   0xc   : > { %p783_p7 = por %p40_p5, %p39_p3  ;;  %s542_s6 = sshll.u32 %s185_s30, 7 }
   0xd   : > { %s551_s7 = sshll.u32 %s707_s23, 7  ;;  %s189_s11 = scalar_lea.vmem [#allocation3], %s542_s6 }
   0xe   : > { %s194_s10 = scalar_lea.hbm %s993_s0, %s551_s7  ;;  %s197_s12 = sshll.u32 %s189_s11, 4  ;;  %s198_s12 = int_to_ptr.vmem [resolvable:$true] %s197_s12 }
   0xf   : > { %s195_s13 = sshll.u32 %s194_s10, 4  ;;  %p794_p8 = pnand %p606_p6, %p776_p4  ;;  %s196_s13 = int_to_ptr.hbm [resolvable:$true] %s195_s13 }
  0x10   : > { %p545_p9 = scmp.ge.s32.totalorder %s707_s23, 1  ;;  %s186_s15 = scalar_lea.sflag [#allocation4], %s185_s30 }
  0x11   : > { %s643_s16 = sshra.s32 %s196_s13, 4  ;;  %p647_p11 = pneg %p794_p8  ;;  %s644_s16 = int_to_ptr.hbm [resolvable:$true] %s643_s16 }
  0x12   : > { %s645_s17 = scalar_lea.hbm %s644_s16, 128  ;;  %s650_s20 = scalar_lea.hbm %s993_s0, 256 }
  0x13   : > { %p646_p10 = scmp.ne.s32.totalorder %s644_s16, %s645_s17  ;;  %p651_p0 = scmp.lt.s32.totalorder %s644_s16, %s993_s0 }
  0x14   : > { %p652_p1 = scmp.lt.s32.totalorder %s650_s20, %s645_s17 }
  0x15   : > { %p648_p12 = pnand %p647_p11, %p646_p10 }
  0x16   : > { %p653_p2 = por %p652_p1, %p651_p0 }
  0x17   : > { %p649_p13 = pneg %p648_p12 }
  0x19   : > { %p654_p3 = pnand %p653_p2, %p649_p13 }
  0x1b   : > { %657 = shalt.err (!%p654_p3)
}
  0x1c   : > { %s709_s28 = smov 128   ;;  %s710_s30 = smov 8  }
  0x1d   : > { %605 = dma.hbm_to_vmem [thread:$0]  (!%p794_p8), %s196_s13, 2048, %s198_s12, %s186_s15, %s709_s28, %s709_s28, %s710_s30  }
  0x1e   : > { %p205_p4 = scmp.lt.s32.totalorder %s707_s23, 3 }
  0x20   : > { %p206_p5 = pnand %p545_p9, %p205_p4 }
  0x21   : > { %s211_s6 = sand.u32 (!%p206_p5), 1, %s699_s21  }
  0x22   : > { %209 = sbr.rel (%p206_p5) target bundleno = 373 (0x175), region = 40  ;;  %s546_s7 = sshll.u32 (!%p206_p5), %s211_s6, 7 }
  0x23   : > { %s212_s8 = scalar_lea.sflag (!%p206_p5), [#allocation4], %s211_s6  ;;  %s813_s9 = scalar_lea.vmem (!%p206_p5), [#allocation3], %s546_s7 }
  0x27   : > { %690 = dma.done.wait (%p783_p7), %s212_s8, 2048  }
  0x28   : > { %692 = vsyncadd (%p783_p7), %s212_s8, 4294965248  ;;  %v281_v0 = vld [vmem:[%s994_s1 + $0x78] sm:$0xff]  ;;  %v280_v1 = vld [vmem:[%s994_s1 + $0x70] sm:$0xff]  ;;  %vm387_vm0 = vcmask 523264   ;;  %s436_s7 = sld [smem:[#allocation2]]  ;;  %vm454_vm1 = vcmask 7168  }
  0x29   : > { %286 = vmatpush.msra.mxu0 %v281_v0  ;;  %552 = vmatpush.msra.mxu1 %v281_v0  ;;  %v279_v2 = vld [vmem:[%s994_s1 + $0x68] sm:$0xff]  ;;  %v278_v3 = vld [vmem:[%s994_s1 + $0x60] sm:$0xff]  ;;  %v277_v4 = vld [vmem:[%s994_s1 + $0x58] sm:$0xff] }
  0x2a   : > { %553 = vmatpush.msra.mxu2 %v281_v0  ;;  %554 = vmatpush.msra.mxu3 %v281_v0  ;;  %v276_v5 = vld [vmem:[%s994_s1 + $0x50] sm:$0xff]  ;;  %v275_v6 = vld [vmem:[%s994_s1 + $0x48] sm:$0xff]  ;;  %v274_v7 = vld [vmem:[%s994_s1 + $0x40] sm:$0xff] }
  0x2b   : > { %287 = vmatpush.msra.mxu0 %v280_v1  ;;  %555 = vmatpush.msra.mxu1 %v280_v1  ;;  %v273_v8 = vld [vmem:[%s994_s1 + $0x38] sm:$0xff]  ;;  %v272_v9 = vld [vmem:[%s994_s1 + $0x30] sm:$0xff]  ;;  %v271_v10 = vld [vmem:[%s994_s1 + $0x28] sm:$0xff] }
  0x2c   : > { %556 = vmatpush.msra.mxu2 %v280_v1  ;;  %557 = vmatpush.msra.mxu3 %v280_v1  ;;  %v270_v11 = vld [vmem:[%s994_s1 + $0x20] sm:$0xff]  ;;  %v269_v12 = vld [vmem:[%s994_s1 + $0x18] sm:$0xff]  ;;  %v268_v13 = vld [vmem:[%s994_s1 + $0x10] sm:$0xff] }
  0x2d   : > { %288 = vmatpush.msra.mxu0 %v279_v2  ;;  %558 = vmatpush.msra.mxu1 %v279_v2  ;;  %v267_v14 = vld [vmem:[%s994_s1 + $0x8] sm:$0xff]  ;;  %v266_v15 = vld [vmem:[%s994_s1] sm:$0xff]  ;;  %v252_v24 = vld [vmem:[%s813_s9 + $0x10] sm:$0xff] }
  0x2e   : > { %559 = vmatpush.msra.mxu2 %v279_v2  ;;  %560 = vmatpush.msra.mxu3 %v279_v2  ;;  %v250_v16 = vld [vmem:[%s813_s9] sm:$0xff]  ;;  %v251_v20 = vld [vmem:[%s813_s9 + $0x8] sm:$0xff]  ;;  %v256_v25 = vld [vmem:[%s813_s9 + $0x30] sm:$0xff] }
  0x2f   : > { %289 = vmatpush.msra.mxu0 %v278_v3  ;;  %561 = vmatpush.msra.mxu1 %v278_v3  ;;  %v254_v17 = vld [vmem:[%s813_s9 + $0x20] sm:$0xff]  ;;  %v255_v21 = vld [vmem:[%s813_s9 + $0x28] sm:$0xff]  ;;  %v260_v26 = vld [vmem:[%s813_s9 + $0x50] sm:$0xff] }
  0x30   : > { %562 = vmatpush.msra.mxu2 %v278_v3  ;;  %563 = vmatpush.msra.mxu3 %v278_v3  ;;  %v258_v18 = vld [vmem:[%s813_s9 + $0x40] sm:$0xff]  ;;  %v259_v22 = vld [vmem:[%s813_s9 + $0x48] sm:$0xff]  ;;  %v264_v27 = vld [vmem:[%s813_s9 + $0x70] sm:$0xff] }
  0x31   : > { %290 = vmatpush.msra.mxu0 %v277_v4  ;;  %564 = vmatpush.msra.mxu1 %v277_v4  ;;  %v262_v19 = vld [vmem:[%s813_s9 + $0x60] sm:$0xff]  ;;  %v263_v23 = vld [vmem:[%s813_s9 + $0x68] sm:$0xff]  ;;  %v253_v28 = vld [vmem:[%s813_s9 + $0x18] sm:$0xff] }
  0x32   : > { %565 = vmatpush.msra.mxu2 %v277_v4  ;;  %566 = vmatpush.msra.mxu3 %v277_v4  ;;  %v257_v29 = vld [vmem:[%s813_s9 + $0x38] sm:$0xff]  ;;  %v886_v32 = vld [vmem:[%s995_s2] ss:$0 sm:$0xff] }
  0x33   : > { %291 = vmatpush.msra.mxu0 %v276_v5  ;;  %567 = vmatpush.msra.mxu1 %v276_v5  ;;  %v261_v30 = vld [vmem:[%s813_s9 + $0x58] sm:$0xff]  ;;  %v893_v37 = vld [vmem:[%s996_s3] ss:$0 sm:$0xff] }
  0x34   : > { %568 = vmatpush.msra.mxu2 %v276_v5  ;;  %569 = vmatpush.msra.mxu3 %v276_v5  ;;  %v265_v31 = vld [vmem:[%s813_s9 + $0x78] sm:$0xff]  ;;  %s547_s9 = sshll.u32 %s538_s4, 4 }
  0x35   : > { %292 = vmatpush.msra.mxu0 %v275_v6  ;;  %570 = vmatpush.msra.mxu1 %v275_v6  ;;  %p245_p6 = scmp.lt.s32.totalorder %s547_s9, 31 }
  0x36   : > { %571 = vmatpush.msra.mxu2 %v275_v6  ;;  %572 = vmatpush.msra.mxu3 %v275_v6 }
  0x37   : > { %293 = vmatpush.msra.mxu0 %v274_v7  ;;  %573 = vmatpush.msra.mxu1 %v274_v7  ;;  %s1007_s9 = smov (!%p245_p6, %s547_s9), 31 }
  0x38   : > { %574 = vmatpush.msra.mxu2 %v274_v7  ;;  %575 = vmatpush.msra.mxu3 %v274_v7  ;;  %s548_s8 = sshll.u32 %s1007_s9, 3 }
  0x39   : > { %294 = vmatpush.msra.mxu0 %v273_v8  ;;  %576 = vmatpush.msra.mxu1 %v273_v8  ;;  %s946_s12 = scalar_lea.vmem %s998_s5, %s548_s8 }
  0x3a   : > { %577 = vmatpush.msra.mxu2 %v273_v8  ;;  %578 = vmatpush.msra.mxu3 %v273_v8 }
  0x3b   : > { %295 = vmatpush.msra.mxu0 %v272_v9  ;;  %579 = vmatpush.msra.mxu1 %v272_v9 }
  0x3c   : > { %580 = vmatpush.msra.mxu2 %v272_v9  ;;  %581 = vmatpush.msra.mxu3 %v272_v9 }
  0x3d   : > { %296 = vmatpush.msra.mxu0 %v271_v10  ;;  %582 = vmatpush.msra.mxu1 %v271_v10 }
  0x3e   : > { %583 = vmatpush.msra.mxu2 %v271_v10  ;;  %584 = vmatpush.msra.mxu3 %v271_v10 }
  0x3f   : > { %297 = vmatpush.msra.mxu0 %v270_v11  ;;  %585 = vmatpush.msra.mxu1 %v270_v11 }
  0x40   : > { %586 = vmatpush.msra.mxu2 %v270_v11  ;;  %587 = vmatpush.msra.mxu3 %v270_v11 }
  0x41   : > { %298 = vmatpush.msra.mxu0 %v269_v12  ;;  %588 = vmatpush.msra.mxu1 %v269_v12 }
  0x42   : > { %589 = vmatpush.msra.mxu2 %v269_v12  ;;  %590 = vmatpush.msra.mxu3 %v269_v12 }
  0x43   : > { %299 = vmatpush.msra.mxu0 %v268_v13  ;;  %591 = vmatpush.msra.mxu1 %v268_v13 }
  0x44   : > { %592 = vmatpush.msra.mxu2 %v268_v13  ;;  %593 = vmatpush.msra.mxu3 %v268_v13 }
  0x45   : > { %300 = vmatpush.msra.mxu0 %v267_v14  ;;  %594 = vmatpush.msra.mxu1 %v267_v14 }
  0x46   : > { %595 = vmatpush.msra.mxu2 %v267_v14  ;;  %596 = vmatpush.msra.mxu3 %v267_v14 }
  0x47   : > { %301 = vmatpush.msra.mxu0 %v266_v15  ;;  %597 = vmatpush.msra.mxu1 %v266_v15 }
  0x48   : > { %302 = vmatmul.f32.vlgmr.msra.gmra.mxu0 %v250_v16  ;;  %314 = vmatmul.f32.vlgmr.msra.gmra.mxu1 %v254_v17 }
  0x49   : > { %598 = vmatpush.msra.mxu2 %v266_v15  ;;  %599 = vmatpush.msra.mxu3 %v266_v15 }
  0x4a   : > { %326 = vmatmul.f32.vlgmr.msra.gmra.mxu2 %v258_v18  ;;  %338 = vmatmul.f32.vlgmr.msra.gmra.mxu3 %v262_v19 }
  0x50   : > { %305 = vmatmul.f32.gmra.mxu0 %v251_v20  ;;  %317 = vmatmul.f32.gmra.mxu1 %v255_v21 }
  0x52   : > { %329 = vmatmul.f32.gmra.mxu2 %v259_v22  ;;  %341 = vmatmul.f32.gmra.mxu3 %v263_v23 }
  0x58   : > { %308 = vmatmul.f32.gmra.mxu0 %v252_v24  ;;  %320 = vmatmul.f32.gmra.mxu1 %v256_v25 }
  0x5a   : > { %332 = vmatmul.f32.gmra.mxu2 %v260_v26  ;;  %344 = vmatmul.f32.gmra.mxu3 %v264_v27 }
  0x60   : > { %311 = vmatmul.f32.gmra.mxu0 %v253_v28  ;;  %323 = vmatmul.f32.gmra.mxu1 %v257_v29 }
  0x62   : > { %335 = vmatmul.f32.gmra.mxu2 %v261_v30  ;;  %347 = vmatmul.f32.gmra.mxu3 %v265_v31 }
  0xc5   : > { %v303_v33 = vpop.f32.mrf.mxu0  ;;  %v315_v34 = vpop.f32.mrf.mxu1 }
  0xc6   : > { %v304_v35 = vadd.f32 %v886_v32, %v303_v33  ;;  %v316_v36 = vadd.f32 %v886_v32, %v315_v34 }
  0xc8   : > { %v351_v38 = vmax.f32 %v304_v35, 0.0  ;;  %v355_v39 = vmax.f32 %v316_v36, 0.0 }
  0xca   : > { %v375_v40 = vmul.f32 %v893_v37, %v355_v39  ;;  %v371_v41 = vmul.f32 %v893_v37, %v351_v38 }
  0xcc   : > { %v400_v42 = vsel %vm387_vm0, %v375_v40, 0.0  ;;  %v388_v43 = vsel %vm387_vm0, %v371_v41, 0.0 }
  0xcd   : > { %v327_v44 = vpop.f32.mrf.mxu2  ;;  %v339_v45 = vpop.f32.mrf.mxu3  ;;  %401 = vadd.xlane.f32.xlu2 %v400_v42  ;;  %389 = vadd.xlane.f32.xlu0 %v388_v43 }
  0xce   : > { %v328_v46 = vadd.f32 %v886_v32, %v327_v44  ;;  %v340_v47 = vadd.f32 %v886_v32, %v339_v45  ;;  %v306_v48 = vpop.f32.mrf.mxu0  ;;  %v318_v49 = vpop.f32.mrf.mxu1 }
  0xcf   : > { %v319_v50 = vadd.f32 %v886_v32, %v318_v49  ;;  %v307_v53 = vadd.f32 %v886_v32, %v306_v48 }
  0xd0   : > { %v359_v51 = vmax.f32 %v328_v46, 0.0  ;;  %v363_v52 = vmax.f32 %v340_v47, 0.0 }
  0xd1   : > { %v356_v56 = vmax.f32 %v319_v50, 0.0  ;;  %v352_v57 = vmax.f32 %v307_v53, 0.0 }
  0xd2   : > { %v379_v54 = vmul.f32 %v893_v37, %v359_v51  ;;  %v383_v55 = vmul.f32 %v893_v37, %v363_v52 }
  0xd3   : > { %v376_v63 = vmul.f32 %v893_v37, %v356_v56  ;;  %v372_v2 = vmul.f32 %v893_v37, %v352_v57 }
  0xd4   : > { %v412_v58 = vsel %vm387_vm0, %v379_v54, 0.0  ;;  %v424_v59 = vsel %vm387_vm0, %v383_v55, 0.0 }
  0xd5   : > { %v330_v60 = vpop.f32.mrf.mxu2  ;;  %413 = vadd.xlane.f32.xlu2 %v412_v58  ;;  %425 = vadd.xlane.f32.xlu0 %v424_v59  ;;  %v342_v61 = vpop.f32.mrf.mxu3  ;;  %v403_v5 = vsel %vm387_vm0, %v376_v63, 0.0  ;;  %v391_v8 = vsel %vm387_vm0, %v372_v2, 0.0 }
  0xd6   : > { %v309_v62 = vpop.f32.mrf.mxu0  ;;  %v331_v1 = vadd.f32 %v886_v32, %v330_v60  ;;  %v321_v4 = vpop.f32.mrf.mxu1  ;;  %v343_v45 = vadd.f32 %v886_v32, %v342_v61 }
  0xd7   : > { %v310_v0 = vadd.f32 %v886_v32, %v309_v62  ;;  %v322_v13 = vadd.f32 %v886_v32, %v321_v4 }
  0xd8   : > { %v360_v7 = vmax.f32 %v331_v1, 0.0  ;;  %v364_v49 = vmax.f32 %v343_v45, 0.0 }
  0xd9   : > { %v353_v3 = vmax.f32 %v310_v0, 0.0  ;;  %v357_v18 = vmax.f32 %v322_v13, 0.0 }
  0xda   : > { %v380_v17 = vmul.f32 %v893_v37, %v360_v7  ;;  %v384_v50 = vmul.f32 %v893_v37, %v364_v49 }
  0xdb   : > { %v373_v6 = vmul.f32 %v893_v37, %v353_v3  ;;  %v377_v28 = vmul.f32 %v893_v37, %v357_v18 }
  0xdc   : > { %v415_v22 = vsel %vm387_vm0, %v380_v17, 0.0  ;;  %v427_v51 = vsel %vm387_vm0, %v384_v50, 0.0 }
  0xdd   : > { %v333_v9 = vpop.f32.mrf.mxu2  ;;  %v394_v10 = vsel %vm387_vm0, %v373_v6, 0.0  ;;  %392 = vadd.xlane.f32.xlu0 %v391_v8  ;;  %404 = vadd.xlane.f32.xlu2 %v403_v5  ;;  %v345_v11 = vpop.f32.mrf.mxu3  ;;  %v406_v36 = vsel %vm387_vm0, %v377_v28, 0.0 }
  0xde   : > { %v334_v12 = vadd.f32 %v886_v32, %v333_v9  ;;  %395 = vadd.xlane.f32.xlu1 %v394_v10  ;;  %v312_v14 = vpop.f32.mrf.mxu0  ;;  %v324_v23 = vpop.f32.mrf.mxu1  ;;  %v346_v27 = vadd.f32 %v886_v32, %v345_v11 }
  0xdf   : > { %v313_v15 = vadd.f32 %v886_v32, %v312_v14  ;;  %v325_v30 = vadd.f32 %v886_v32, %v324_v23 }
  0xe0   : > { %v361_v16 = vmax.f32 %v334_v12, 0.0  ;;  %v365_v34 = vmax.f32 %v346_v27, 0.0 }
  0xe1   : > { %v354_v20 = vmax.f32 %v313_v15, 0.0  ;;  %v358_v39 = vmax.f32 %v325_v30, 0.0 }
  0xe2   : > { %v381_v19 = vmul.f32 %v893_v37, %v361_v16  ;;  %v385_v42 = vmul.f32 %v893_v37, %v365_v34 }
  0xe3   : > { %v374_v31 = vmul.f32 %v893_v37, %v354_v20  ;;  %v378_v44 = vmul.f32 %v893_v37, %v358_v39 }
  0xe4   : > { %v418_v21 = vsel %vm387_vm0, %v381_v19, 0.0  ;;  %v430_v46 = vsel %vm387_vm0, %v385_v42, 0.0 }
  0xe5   : > { %v336_v24 = vpop.f32.mrf.mxu2  ;;  %416 = vadd.xlane.f32.xlu0 %v415_v22  ;;  %v348_v25 = vpop.f32.mrf.mxu3  ;;  %v397_v40 = vsel %vm387_vm0, %v374_v31, 0.0  ;;  %v409_v48 = vsel %vm387_vm0, %v378_v44, 0.0 }
  0xe6   : > { %v337_v26 = vadd.f32 %v886_v32, %v336_v24  ;;  %419 = vadd.xlane.f32.xlu1 %v418_v21  ;;  %v349_v29 = vadd.f32 %v886_v32, %v348_v25  ;;  %v437_v32 = vstv %s436_s7 }
  0xe8   : > { %v362_v33 = vmax.f32 %v337_v26, 0.0  ;;  %v366_v38 = vmax.f32 %v349_v29, 0.0 }
  0xea   : > { %v382_v35 = vmul.f32 %v893_v37, %v362_v33  ;;  %v386_v43 = vmul.f32 %v893_v37, %v366_v38 }
  0xec   : > { %v421_v41 = vsel %vm387_vm0, %v382_v35, 0.0  ;;  %v433_v47 = vsel %vm387_vm0, %v386_v43, 0.0 }
  0xed   : > { %422 = vadd.xlane.f32.xlu2 %v421_v41  ;;  %407 = vadd.xlane.f32.xlu0 %v406_v36 }
  0xee   : > { %398 = vadd.xlane.f32.xlu1 %v397_v40 }
  0xf5   : > { %431 = vadd.xlane.f32.xlu2 %v430_v46  ;;  %434 = vadd.xlane.f32.xlu0 %v433_v47 }
  0xf6   : > { %410 = vadd.xlane.f32.xlu1 %v409_v48 }
  0xfe   : > { %428 = vadd.xlane.f32.xlu1 %v427_v51 }
 0x140   : > { %v402_v52 = vpop.xlane.xlu2 %401  ;;  %v390_v53 = vpop.xlane.xlu0 %389 }
 0x141   : > { %v442_v37 = vadd.f32 %v437_v32, %v402_v52  ;;  %v438_v54 = vadd.f32 %v437_v32, %v390_v53 }
 0x143   : > { %459 = vst.msk [vmem:[%s946_s12 + $0x20] sm:$0xff] %vm454_vm1, %v442_v37 }
 0x144   : > { %455 = vst.msk [vmem:[%s946_s12] sm:$0xff] %vm454_vm1, %v438_v54 }
 0x148   : > { %v414_v55 = vpop.xlane.xlu2 %413  ;;  %v426_v56 = vpop.xlane.xlu0 %425 }
 0x149   : > { %v446_v57 = vadd.f32 %v437_v32, %v414_v55  ;;  %v450_v58 = vadd.f32 %v437_v32, %v426_v56 }
 0x14b   : > { %463 = vst.msk [vmem:[%s946_s12 + $0x40] sm:$0xff] %vm454_vm1, %v446_v57 }
 0x14c   : > { %467 = vst.msk [vmem:[%s946_s12 + $0x60] sm:$0xff] %vm454_vm1, %v450_v58 }
 0x150   : > { %v393_v59 = vpop.xlane.xlu0 %392  ;;  %v405_v60 = vpop.xlane.xlu2 %404 }
 0x151   : > { %v396_v61 = vpop.xlane.xlu1 %395  ;;  %v439_v62 = vadd.f32 %v437_v32, %v393_v59  ;;  %v443_v63 = vadd.f32 %v437_v32, %v405_v60 }
 0x152   : > { %v440_v0 = vadd.f32 %v437_v32, %v396_v61 }
 0x153   : > { %456 = vst.msk [vmem:[%s946_s12 + $0x8] sm:$0xff] %vm454_vm1, %v439_v62 }
 0x154   : > { %457 = vst.msk [vmem:[%s946_s12 + $0x10] sm:$0xff] %vm454_vm1, %v440_v0 }
 0x155   : > { %460 = vst.msk [vmem:[%s946_s12 + $0x28] sm:$0xff] %vm454_vm1, %v443_v63 }
 0x158   : > { %v417_v1 = vpop.xlane.xlu0 %416 }
 0x159   : > { %v420_v2 = vpop.xlane.xlu1 %419  ;;  %v447_v3 = vadd.f32 %v437_v32, %v417_v1 }
 0x15a   : > { %v448_v4 = vadd.f32 %v437_v32, %v420_v2 }
 0x15b   : > { %464 = vst.msk [vmem:[%s946_s12 + $0x48] sm:$0xff] %vm454_vm1, %v447_v3 }
 0x15c   : > { %465 = vst.msk [vmem:[%s946_s12 + $0x50] sm:$0xff] %vm454_vm1, %v448_v4 }
 0x160   : > { %v423_v5 = vpop.xlane.xlu2 %422  ;;  %v408_v6 = vpop.xlane.xlu0 %407 }
 0x161   : > { %v449_v7 = vadd.f32 %v437_v32, %v423_v5  ;;  %v399_v8 = vpop.xlane.xlu1 %398  ;;  %v444_v9 = vadd.f32 %v437_v32, %v408_v6 }
 0x162   : > { %v441_v10 = vadd.f32 %v437_v32, %v399_v8 }
 0x163   : > { %466 = vst.msk [vmem:[%s946_s12 + $0x58] sm:$0xff] %vm454_vm1, %v449_v7 }
 0x164   : > { %458 = vst.msk [vmem:[%s946_s12 + $0x18] sm:$0xff] %vm454_vm1, %v441_v10 }
 0x165   : > { %461 = vst.msk [vmem:[%s946_s12 + $0x30] sm:$0xff] %vm454_vm1, %v444_v9 }
 0x168   : > { %v432_v11 = vpop.xlane.xlu2 %431  ;;  %v435_v12 = vpop.xlane.xlu0 %434 }
 0x169   : > { %v452_v13 = vadd.f32 %v437_v32, %v432_v11  ;;  %v411_v14 = vpop.xlane.xlu1 %410  ;;  %v453_v15 = vadd.f32 %v437_v32, %v435_v12 }
 0x16a   : > { %v445_v16 = vadd.f32 %v437_v32, %v411_v14 }
 0x16b   : > { %469 = vst.msk [vmem:[%s946_s12 + $0x70] sm:$0xff] %vm454_vm1, %v452_v13 }
 0x16c   : > { %462 = vst.msk [vmem:[%s946_s12 + $0x38] sm:$0xff] %vm454_vm1, %v445_v16 }
 0x16d   : > { %470 = vst.msk [vmem:[%s946_s12 + $0x78] sm:$0xff] %vm454_vm1, %v453_v15 }
 0x171   : > { %v429_v17 = vpop.xlane.xlu1 %428 }
 0x172   : > { %v451_v18 = vadd.f32 %v437_v32, %v429_v17 }
 0x174   : > { %468 = vst.msk [vmem:[%s946_s12 + $0x68] sm:$0xff] %vm454_vm1, %v451_v18 }
 0x175 PF: > { %p16_p7 = scmp.ge.s32.totalorder %s764_s24, 4   ;;  %s1002_s20 = smov %s699_s21 }
 0x176   : > { %s1003_s21 = smov %s703_s22  ;;  %s1004_s22 = smov %s774_s27 }
 0x177   : > { %s1005_s23 = smov %s764_s24  ;;  %18 = sbr.rel (!%p16_p7) target bundleno = 5 (0x5), region = 80 }
 0x17c   :  { %493 = vsyncpa [#allocation4], 1 }
 0x17d   :  { %495 = vsyncpa [#allocation4 + $0x1], 1 }

</bundles_post_ra>
